<compile_context>
chip_gen: v7x
topology: tpu7x:2x2x1
jax: 0.10.0
libtpu: 0.0.40
codegen_flags: <defaults>
</compile_context>

<pallas_src>
import functools

import jax
import jax.numpy as jnp
import numpy as np
from jax import lax
from jax.experimental import pallas as pl
from jax.experimental.pallas import tpu as pltpu


# ---------------------------------------------------------------------------
# Generation-aware VMEM budget.
# ---------------------------------------------------------------------------

def _default_vmem_limit():
    try:
        cap = int(pltpu.get_tpu_info().vmem_capacity_bytes)
    except Exception:
        cap = 64 * 1024 * 1024          # v7x-safe fallback
    return max(32 * 1024 * 1024, min(cap * 3 // 4, 96 * 1024 * 1024))


_VMEM_LIMIT = _default_vmem_limit()


# ---------------------------------------------------------------------------
# Tiling helpers
# ---------------------------------------------------------------------------

def _round_up(x, m):
    return ((x + m - 1) // m) * m


def _pick_tile(dim, max_tile, align):
    """Largest tile <= max_tile that divides `dim` and is a multiple of
    `align`; the full dimension if it already fits.  Raises instead of
    silently returning an oversized block (VMEM-budget guard)."""
    if dim <= max_tile:
        return dim
    t = (max_tile // align) * align
    while t >= align:
        if dim % t == 0:
            return t
        t -= align
    raise ValueError(
        f"pallas_linear: no {align}-aligned tile <= {max_tile} divides {dim}")


def _pad_seq(t, target_len):
    """Zero-pad a (B, N, D) tensor along the sequence axis to target_len."""
    n = t.shape[1]
    if n == target_len:
        return t
    return jnp.pad(t, ((0, 0), (0, target_len - n), (0, 0)))


# ---------------------------------------------------------------------------
# Linear (matmul) kernels.  Direct-store (2-D grid) when Din fits one block,
# K-tiled accumulator (3-D grid) otherwise.
# ---------------------------------------------------------------------------

def _linear_direct_kernel(x_ref, w_ref, o_ref):
    o_ref[...] = jnp.dot(x_ref[...], w_ref[...],
                         preferred_element_type=jnp.float32).astype(o_ref.dtype)


def _linear_direct_bias_kernel(x_ref, w_ref, b_ref, o_ref):
    acc = jnp.dot(x_ref[...], w_ref[...], preferred_element_type=jnp.float32)
    o_ref[...] = (acc + b_ref[...].astype(jnp.float32)).astype(o_ref.dtype)


def _linear_acc_kernel(x_ref, w_ref, o_ref, acc_ref):
    @pl.when(pl.program_id(2) == 0)
    def _():
        acc_ref[...] = jnp.zeros_like(acc_ref)

    acc_ref[...] += jnp.dot(x_ref[...], w_ref[...],
                            preferred_element_type=jnp.float32)

    @pl.when(pl.program_id(2) == pl.num_programs(2) - 1)
    def _():
        o_ref[...] = acc_ref[...].astype(o_ref.dtype)


def _linear_acc_bias_kernel(x_ref, w_ref, b_ref, o_ref, acc_ref):
    @pl.when(pl.program_id(2) == 0)
    def _():
        acc_ref[...] = jnp.zeros_like(acc_ref)

    acc_ref[...] += jnp.dot(x_ref[...], w_ref[...],
                            preferred_element_type=jnp.float32)

    @pl.when(pl.program_id(2) == pl.num_programs(2) - 1)
    def _():
        o_ref[...] = (acc_ref[...] + b_ref[...].astype(jnp.float32)
                      ).astype(o_ref.dtype)


def pallas_linear(x2d, w, b=None, *, tm_max=512, tn_max=512, tk_max=2048):
    """x2d: (M, Din) @ w: (Din, Dout) [+ b: (1, Dout)] -> (M, Dout)."""
    M, Din = x2d.shape
    Dout = w.shape[1]
    tm = _pick_tile(M, tm_max, 8)
    tn = _pick_tile(Dout, tn_max, 128)
    tk = _pick_tile(Din, tk_max, 128)
    nk = Din // tk
    has_bias = b is not None

    if nk == 1:
        # Full-Din block: no K axis, no accumulator, direct store.
        grid = (M // tm, Dout // tn)
        in_specs = [pl.BlockSpec((tm, tk), lambda i, j: (i, 0)),
                    pl.BlockSpec((tk, tn), lambda i, j: (0, j))]
        if has_bias:
            in_specs.append(pl.BlockSpec((1, tn), lambda i, j: (0, j)))
        out_spec = pl.BlockSpec((tm, tn), lambda i, j: (i, j))
        scratch = []
        sem = ("parallel", "parallel")
        kernel = _linear_direct_bias_kernel if has_bias else _linear_direct_kernel
    else:
        grid = (M // tm, Dout // tn, nk)
        in_specs = [pl.BlockSpec((tm, tk), lambda i, j, k: (i, k)),
                    pl.BlockSpec((tk, tn), lambda i, j, k: (k, j))]
        if has_bias:
            in_specs.append(pl.BlockSpec((1, tn), lambda i, j, k: (0, j)))
        out_spec = pl.BlockSpec((tm, tn), lambda i, j, k: (i, j))
        scratch = [pltpu.VMEM((tm, tn), jnp.float32)]
        sem = ("parallel", "parallel", "arbitrary")
        kernel = _linear_acc_bias_kernel if has_bias else _linear_acc_kernel

    args = [x2d, w] + ([b] if has_bias else [])
    return pl.pallas_call(
        kernel,
        out_shape=jax.ShapeDtypeStruct((M, Dout), x2d.dtype),
        grid_spec=pltpu.PrefetchScalarGridSpec(
            num_scalar_prefetch=0,
            grid=grid,
            in_specs=in_specs,
            out_specs=out_spec,
            scratch_shapes=scratch),
        compiler_params=pltpu.CompilerParams(
            dimension_semantics=sem,
            vmem_limit_bytes=_VMEM_LIMIT),
    )(*args)


# ---------------------------------------------------------------------------
# Flash attention with the output projection fused into the finalize.
# Heads stay packed on the lane axis (B, N, heads*dim_head); online softmax
# scratch (m, l, acc) lives in VMEM in f32.
# ---------------------------------------------------------------------------

def _flash_attn_kernel(q_ref, kv_ref, wo_ref, bo_ref, o_ref,
                       m_sc, l_sc, acc_sc, *,
                       heads, dim_head, kv_len, mask_last):
    ki = pl.program_id(2)
    nk = pl.num_programs(2)
    inner = heads * dim_head
    tq = q_ref.shape[1]
    tk = kv_ref.shape[1]

    @pl.when(ki == 0)
    def _():
        m_sc[...] = jnp.full_like(m_sc, -jnp.inf)
        l_sc[...] = jnp.zeros_like(l_sc)
        acc_sc[...] = jnp.zeros_like(acc_sc)

    q_all = q_ref[0]                    # (tq, inner), storage dtype
    kv_all = kv_ref[0]                  # (tk, 2*inner)
    k_all = kv_all[:, :inner]
    v_all = kv_all[:, inner:]

    def attend(masked):
        if masked:
            # Computed once, outside the per-head loop.  Only the last KV tile
            # can hold padding, so this whole path is pl.when-gated below.
            col = ki * tk + lax.broadcasted_iota(jnp.int32, (tq, tk), 1)
            valid = col < kv_len
            neg_bias = jnp.where(valid, 0.0, -1e30).astype(jnp.float32)
        for h in range(heads):
            sl = slice(h * dim_head, (h + 1) * dim_head)
            q = q_all[:, sl]
            k = k_all[:, sl]
            v = v_all[:, sl]
            # QK^T with K in its stored (tk, d) layout; f32 accumulation.
            s = lax.dot_general(q, k, (((1,), (1,)), ((), ())),
                                preferred_element_type=jnp.float32)
            if masked:
                s = s + neg_bias
            m_prev = m_sc[h]                                         # (tq, 1)
            m_new = jnp.maximum(m_prev, jnp.max(s, axis=-1, keepdims=True))
            alpha = jnp.exp(m_prev - m_new)
            p = jnp.exp(s - m_new)
            if masked:
                # Robust normalization even if a tile were fully padded.
                p = jnp.where(valid, p, 0.0)
            l_sc[h] = alpha * l_sc[h] + jnp.sum(p, axis=-1, keepdims=True)
            acc_sc[h] = alpha * acc_sc[h] + lax.dot_general(
                p.astype(v.dtype), v, (((1,), (0,)), ((), ())),
                preferred_element_type=jnp.float32)
            m_sc[h] = m_new

    if mask_last:
        @pl.when(ki == nk - 1)
        def _():
            attend(True)

        @pl.when(ki != nk - 1)
        def _():
            attend(False)
    else:
        attend(False)

    @pl.when(ki == nk - 1)
    def _():
        # Fused output projection: out = concat_h(acc_h / l_h) @ wo + bo,
        # decomposed per head so no lane-concat is needed.
        wo = wo_ref[...]                                  # (inner, dout)
        out = None
        for h in range(heads):
            l = l_sc[h]
            inv = pl.reciprocal(l, approx=True)           # EUP slot
            inv = inv * (2.0 - l * inv)                   # Newton step -> ~f32
            oh = (acc_sc[h] * inv).astype(wo.dtype)       # (tq, dim_head)
            contrib = lax.dot_general(
                oh, wo[h * dim_head:(h + 1) * dim_head, :],
                (((1,), (0,)), ((), ())),
                preferred_element_type=jnp.float32)
            out = contrib if out is None else out + contrib
        out = out + bo_ref[...].astype(jnp.float32)
        o_ref[0] = out.astype(o_ref.dtype)


def pallas_attention_out_proj(q, kv, wo, bo, heads, dim_head, kv_len, *, tq, tk):
    """q: (B, Nq_p, H*D), kv: (B, Nk_p, 2*H*D), wo: (H*D, Dq), bo: (1, Dq)."""
    B, Nq_p, inner = q.shape
    Nk_p = kv.shape[1]
    dout = wo.shape[1]
    assert inner == heads * dim_head and wo.shape[0] == inner
    grid = (B, Nq_p // tq, Nk_p // tk)
    kernel = functools.partial(
        _flash_attn_kernel, heads=heads, dim_head=dim_head,
        kv_len=kv_len, mask_last=(kv_len != Nk_p))
    return pl.pallas_call(
        kernel,
        out_shape=jax.ShapeDtypeStruct((B, Nq_p, dout), q.dtype),
        grid_spec=pltpu.PrefetchScalarGridSpec(
            num_scalar_prefetch=0,
            grid=grid,
            in_specs=[
                pl.BlockSpec((1, tq, inner), lambda b, qi, ki: (b, qi, 0)),
                pl.BlockSpec((1, tk, 2 * inner), lambda b, qi, ki: (b, ki, 0)),
                # wo / bo: constant block index -> fetched once, VMEM-resident.
                pl.BlockSpec((inner, dout), lambda b, qi, ki: (0, 0)),
                pl.BlockSpec((1, dout), lambda b, qi, ki: (0, 0)),
            ],
            out_specs=pl.BlockSpec((1, tq, dout), lambda b, qi, ki: (b, qi, 0)),
            scratch_shapes=[pltpu.VMEM((heads, tq, 1), jnp.float32),
                            pltpu.VMEM((heads, tq, 1), jnp.float32),
                            pltpu.VMEM((heads, tq, dim_head), jnp.float32)]),
        compiler_params=pltpu.CompilerParams(
            dimension_semantics=("parallel", "parallel", "arbitrary"),
            vmem_limit_bytes=_VMEM_LIMIT),
    )(q, kv, wo, bo)


# ---------------------------------------------------------------------------
# CrossAttention forward
# ---------------------------------------------------------------------------

def prepare_cross_attention_params(params, dim_head):
    """One-time weight preparation -- call at load time, NOT per forward."""
    scale = 1.0 / float(np.sqrt(dim_head))
    wq = params["wq"]
    prepared = {
        "wq": (wq.astype(jnp.float32) * scale).astype(wq.dtype),
        "wkv": jnp.concatenate([params["wk"], params["wv"]], axis=1),
        "wo": params["wo"],
        "bo": params["bo"],
        "bq": None,
        "bkv": None,
    }
    bq = params.get("bq")
    if bq is not None:
        prepared["bq"] = (bq.astype(jnp.float32) * scale).astype(bq.dtype)
    if params.get("bk") is not None:
        prepared["bkv"] = jnp.concatenate([params["bk"], params["bv"]], axis=1)
    return prepared


def cross_attention_forward(x, context, prepared, heads, dim_head, *,
                            tq_max=512, tk_max=512):
    """Mirrors CrossAttention.forward (Dropout(p=0.0) is the identity)."""
    B, Nq, _ = x.shape
    inner = heads * dim_head

    # Attention tiles picked up front; host-side padding is made a multiple of
    # them, so tile sizes never silently exceed the VMEM budget.
    tq = min(tq_max, _round_up(Nq, 8))
    Nq_p = _round_up(Nq, tq)
    x2d = _pad_seq(x, Nq_p).reshape(B * Nq_p, -1)

    if context is None:
        kv_src, kv_len = x, Nq
    else:
        kv_src, kv_len = context, context.shape[1]
    tk = min(tk_max, _round_up(kv_len, 8))
    Nk_p = _round_up(kv_len, tk)

    # Projections: Q separate, K|V fused (single read of the context; no
    # wrapper-side slice copies of a packed QKV buffer).
    q = pallas_linear(x2d, prepared["wq"], prepared["bq"]
                      ).reshape(B, Nq_p, inner)
    if context is None and Nk_p == Nq_p:
        ctx2d = x2d                      # reuse the padded activations
    else:
        ctx2d = _pad_seq(kv_src, Nk_p).reshape(B * Nk_p, -1)
    kv = pallas_linear(ctx2d, prepared["wkv"], prepared["bkv"]
                       ).reshape(B, Nk_p, 2 * inner)

    # Flash attention with the output projection (wo, bo) fused in.
    out = pallas_attention_out_proj(q, kv, prepared["wo"], prepared["bo"],
                                    heads, dim_head, kv_len, tq=tq, tk=tk)
    return out[:, :Nq] if Nq_p != Nq else out


# Pure-JAX reference for the correctness check.
def reference_forward(x, context, params, heads, dim_head):
    if context is None:
        context = x
    B, Nq, _ = x.shape
    Nk = context.shape[1]
    q = x @ params["wq"]
    k = context @ params["wk"]
    v = context @ params["wv"]
    q = q.reshape(B, Nq, heads, dim_head).transpose(0, 2, 1, 3)
    k = k.reshape(B, Nk, heads, dim_head).transpose(0, 2, 1, 3)
    v = v.reshape(B, Nk, heads, dim_head).transpose(0, 2, 1, 3)
    s = jnp.einsum("bhqd,bhkd->bhqk", q, k) / jnp.sqrt(jnp.float32(dim_head))
    p = jax.nn.softmax(s, axis=-1)
    o = jnp.einsum("bhqk,bhkd->bhqd", p, v)
    o = o.transpose(0, 2, 1, 3).reshape(B, Nq, heads * dim_head)
    return o @ params["wo"] + params["bo"]


if __name__ == "__main__":
    # Small shapes consistent with the module.
    B, Nq, Nk = 2, 16, 8
    query_dim, context_dim = 32, 32
    heads, dim_head = 2, 16
    inner = heads * dim_head

    key = jax.random.PRNGKey(0)
    keys = jax.random.split(key, 12)

    x = jax.random.normal(keys[0], (B, Nq, query_dim), dtype=jnp.float32)
    context = jax.random.normal(keys[1], (B, Nk, context_dim), dtype=jnp.float32)

    # Deterministic parameter init (stored as (in, out); to_q/k/v bias=False).
    params = {
        "wq": jax.random.normal(keys[2], (query_dim, inner), jnp.float32) * 0.05,
        "wk": jax.random.normal(keys[3], (context_dim, inner), jnp.float32) * 0.05,
        "wv": jax.random.normal(keys[4], (context_dim, inner), jnp.float32) * 0.05,
        "wo": jax.random.normal(keys[5], (inner, query_dim), jnp.float32) * 0.05,
        "bo": jax.random.normal(keys[6], (1, query_dim), jnp.float32) * 0.05,
    }

    # One-time weight prep (scale fold + K|V fusion), outside the jitted fwd.
    prepared = prepare_cross_attention_params(params, dim_head)
    fwd = jax.jit(cross_attention_forward, static_argnums=(3, 4))

    # 1) Cross-attention with explicit context.
    out = jax.block_until_ready(fwd(x, context, prepared, heads, dim_head))
    ref = reference_forward(x, context, params, heads, dim_head)
    np.testing.assert_allclose(np.asarray(out), np.asarray(ref),
                               atol=2e-3, rtol=2e-3)

    # 2) Self-attention (context=None).
    out_s = jax.block_until_ready(fwd(x, None, prepared, heads, dim_head))
    ref_s = reference_forward(x, None, params, heads, dim_head)
    np.testing.assert_allclose(np.asarray(out_s), np.asarray(ref_s),
                               atol=2e-3, rtol=2e-3)

    # 3) Ragged sequence lengths (host-side padding + last-KV-tile mask path).
    x_r = jax.random.normal(keys[7], (B, 12, query_dim), dtype=jnp.float32)
    c_r = jax.random.normal(keys[8], (B, 5, context_dim), dtype=jnp.float32)
    out_r = jax.block_until_ready(fwd(x_r, c_r, prepared, heads, dim_head))
    ref_r = reference_forward(x_r, c_r, params, heads, dim_head)
    np.testing.assert_allclose(np.asarray(out_r), np.asarray(ref_r),
                               atol=2e-3, rtol=2e-3)

    # 4) Exercise the K-tiled (accumulator) linear path with bias directly.
    xk = jax.random.normal(keys[9], (64, 256), jnp.float32)
    wk_ = jax.random.normal(keys[10], (256, 128), jnp.float32) * 0.05
    bk_ = jax.random.normal(keys[11], (1, 128), jnp.float32) * 0.05
    yk = jax.block_until_ready(pallas_linear(xk, wk_, bk_, tk_max=128))
    np.testing.assert_allclose(np.asarray(yk), np.asarray(xk @ wk_ + bk_),
                               atol=2e-2, rtol=2e-2)

    print("KERNEL_OK")
</pallas_src>

<mosaic_0001>
module attributes {stable_mosaic.version = 11 : i64} {
  func.func @_linear_direct_kernel(%arg0: i32, %arg1: i32, %arg2: memref<32x32xf32, #tpu.memory_space<vmem>>, %arg3: memref<32x32xf32, #tpu.memory_space<vmem>>, %arg4: memref<32x32xf32, #tpu.memory_space<vmem>>) attributes {dimension_semantics = [#tpu.dimension_semantics<parallel>, #tpu.dimension_semantics<parallel>], iteration_bounds = array<i64: 1, 1>, scalar_prefetch = 0 : i64, scratch_operands = 0 : i64, tpu.core_type = #tpu.core_type<tc>, window_params = [{transform_indices = @transform_0, window_bounds = array<i64: 32, 32>}, {transform_indices = @transform_1, window_bounds = array<i64: 32, 32>}, {transform_indices = @transform_2, window_bounds = array<i64: 32, 32>}]} {
    %c0 = arith.constant 0 : index
    %c0_0 = arith.constant 0 : index
    %0 = vector.load %arg2[%c0, %c0_0] : memref<32x32xf32, #tpu.memory_space<vmem>>, vector<32x32xf32>
    %c0_1 = arith.constant 0 : index
    %c0_2 = arith.constant 0 : index
    %1 = vector.load %arg3[%c0_1, %c0_2] : memref<32x32xf32, #tpu.memory_space<vmem>>, vector<32x32xf32>
    %cst = arith.constant dense<0.000000e+00> : vector<32x32xf32>
    %2 = tpu.matmul %0, %1, %cst {dimension_numbers = #tpu.dot_dimension_numbers<[1], [0], [0], [1], [0, 0, 1, 1], [], []>} : vector<32x32xf32>, vector<32x32xf32>, vector<32x32xf32> -> vector<32x32xf32>
    %c0_3 = arith.constant 0 : index
    %c0_4 = arith.constant 0 : index
    %3 = vector.load %arg4[%c0_3, %c0_4] : memref<32x32xf32, #tpu.memory_space<vmem>>, vector<32x32xf32>
    tpu.vector_store %arg4[%c0_3, %c0_4], %2 {strides = array<i32>} : memref<32x32xf32, #tpu.memory_space<vmem>>, vector<32x32xf32>,
    return
  }
  func.func @transform_0(%arg0: i32, %arg1: i32) -> (i32, i32) {
    %c0_i32 = arith.constant 0 : i32
    %c0_i32_0 = arith.constant 0 : i32
    return %arg0, %c0_i32 : i32, i32
  }
  func.func @transform_1(%arg0: i32, %arg1: i32) -> (i32, i32) {
    %c0_i32 = arith.constant 0 : i32
    %c0_i32_0 = arith.constant 0 : i32
    return %c0_i32, %arg1 : i32, i32
  }
  func.func @transform_2(%arg0: i32, %arg1: i32) -> (i32, i32) {
    %c0_i32 = arith.constant 0 : i32
    return %arg0, %arg1 : i32, i32
  }
}

module attributes {stable_mosaic.version = 11 : i64} {
  func.func @_linear_direct_kernel(%arg0: i32, %arg1: i32, %arg2: memref<16x32xf32, #tpu.memory_space<vmem>>, %arg3: memref<32x64xf32, #tpu.memory_space<vmem>>, %arg4: memref<16x64xf32, #tpu.memory_space<vmem>>) attributes {dimension_semantics = [#tpu.dimension_semantics<parallel>, #tpu.dimension_semantics<parallel>], iteration_bounds = array<i64: 1, 1>, scalar_prefetch = 0 : i64, scratch_operands = 0 : i64, tpu.core_type = #tpu.core_type<tc>, window_params = [{transform_indices = @transform_0, window_bounds = array<i64: 16, 32>}, {transform_indices = @transform_1, window_bounds = array<i64: 32, 64>}, {transform_indices = @transform_2, window_bounds = array<i64: 16, 64>}]} {
    %c0 = arith.constant 0 : index
    %c0_0 = arith.constant 0 : index
    %0 = vector.load %arg2[%c0, %c0_0] : memref<16x32xf32, #tpu.memory_space<vmem>>, vector<16x32xf32>
    %c0_1 = arith.constant 0 : index
    %c0_2 = arith.constant 0 : index
    %1 = vector.load %arg3[%c0_1, %c0_2] : memref<32x64xf32, #tpu.memory_space<vmem>>, vector<32x64xf32>
    %cst = arith.constant dense<0.000000e+00> : vector<16x64xf32>
    %2 = tpu.matmul %0, %1, %cst {dimension_numbers = #tpu.dot_dimension_numbers<[1], [0], [0], [1], [0, 0, 1, 1], [], []>} : vector<16x32xf32>, vector<32x64xf32>, vector<16x64xf32> -> vector<16x64xf32>
    %c0_3 = arith.constant 0 : index
    %c0_4 = arith.constant 0 : index
    %3 = vector.load %arg4[%c0_3, %c0_4] : memref<16x64xf32, #tpu.memory_space<vmem>>, vector<16x64xf32>
    tpu.vector_store %arg4[%c0_3, %c0_4], %2 {strides = array<i32>} : memref<16x64xf32, #tpu.memory_space<vmem>>, vector<16x64xf32>,
    return
  }
  func.func @transform_0(%arg0: i32, %arg1: i32) -> (i32, i32) {
    %c0_i32 = arith.constant 0 : i32
    %c0_i32_0 = arith.constant 0 : i32
    return %arg0, %c0_i32 : i32, i32
  }
  func.func @transform_1(%arg0: i32, %arg1: i32) -> (i32, i32) {
    %c0_i32 = arith.constant 0 : i32
    %c0_i32_0 = arith.constant 0 : i32
    return %c0_i32, %arg1 : i32, i32
  }
  func.func @transform_2(%arg0: i32, %arg1: i32) -> (i32, i32) {
    %c0_i32 = arith.constant 0 : i32
    return %arg0, %arg1 : i32, i32
  }
}

module attributes {stable_mosaic.version = 11 : i64} {
  func.func @_flash_attn_kernel(%arg0: i32, %arg1: i32, %arg2: i32, %arg3: memref<1x16x32xf32, #tpu.memory_space<vmem>>, %arg4: memref<1x8x64xf32, #tpu.memory_space<vmem>>, %arg5: memref<32x32xf32, #tpu.memory_space<vmem>>, %arg6: memref<1x32xf32, #tpu.memory_space<vmem>>, %arg7: memref<1x16x32xf32, #tpu.memory_space<vmem>>, %arg8: memref<2x16x1xf32, #tpu.memory_space<vmem>>, %arg9: memref<2x16x1xf32, #tpu.memory_space<vmem>>, %arg10: memref<2x16x16xf32, #tpu.memory_space<vmem>>) attributes {dimension_semantics = [#tpu.dimension_semantics<parallel>, #tpu.dimension_semantics<parallel>, #tpu.dimension_semantics<arbitrary>], iteration_bounds = array<i64: 2, 1, 1>, scalar_prefetch = 0 : i64, scratch_operands = 3 : i64, tpu.core_type = #tpu.core_type<tc>, window_params = [{transform_indices = @transform_0, window_bounds = array<i64: 1, 16, 32>}, {transform_indices = @transform_1, window_bounds = array<i64: 1, 8, 64>}, {pipeline_mode = #tpu.pipeline_mode<synchronous>, transform_indices = @transform_2, window_bounds = array<i64: 32, 32>}, {pipeline_mode = #tpu.pipeline_mode<synchronous>, transform_indices = @transform_3, window_bounds = array<i64: 1, 32>}, {transform_indices = @transform_4, window_bounds = array<i64: 1, 16, 32>}]} {
    %c0_i32 = arith.constant 0 : i32
    %0 = arith.cmpi eq, %arg2, %c0_i32 : i32
    %1 = arith.extui %0 : i1 to i32
    %c0_i32_0 = arith.constant 0 : i32
    %2 = arith.cmpi ne, %1, %c0_i32_0 : i32
    scf.if %2 {
      %cst_50 = arith.constant 0xFF800000 : f32
      %82 = vector.broadcast %cst_50 : f32 to vector<2x16x1xf32>
      %c0_51 = arith.constant 0 : index
      %c0_52 = arith.constant 0 : index
      %c0_53 = arith.constant 0 : index
      %83 = vector.load %arg8[%c0_51, %c0_52, %c0_53] : memref<2x16x1xf32, #tpu.memory_space<vmem>>, vector<2x16x1xf32>
      tpu.vector_store %arg8[%c0_51, %c0_52, %c0_53], %82 {strides = array<i32>} : memref<2x16x1xf32, #tpu.memory_space<vmem>>, vector<2x16x1xf32>,
      %cst_54 = arith.constant 0.000000e+00 : f32
      %84 = vector.broadcast %cst_54 : f32 to vector<2x16x1xf32>
      %c0_55 = arith.constant 0 : index
      %c0_56 = arith.constant 0 : index
      %c0_57 = arith.constant 0 : index
      %85 = vector.load %arg9[%c0_55, %c0_56, %c0_57] : memref<2x16x1xf32, #tpu.memory_space<vmem>>, vector<2x16x1xf32>
      tpu.vector_store %arg9[%c0_55, %c0_56, %c0_57], %84 {strides = array<i32>} : memref<2x16x1xf32, #tpu.memory_space<vmem>>, vector<2x16x1xf32>,
      %cst_58 = arith.constant 0.000000e+00 : f32
      %86 = vector.broadcast %cst_58 : f32 to vector<2x16x16xf32>
      %c0_59 = arith.constant 0 : index
      %c0_60 = arith.constant 0 : index
      %c0_61 = arith.constant 0 : index
      %87 = vector.load %arg10[%c0_59, %c0_60, %c0_61] : memref<2x16x16xf32, #tpu.memory_space<vmem>>, vector<2x16x16xf32>
      tpu.vector_store %arg10[%c0_59, %c0_60, %c0_61], %86 {strides = array<i32>} : memref<2x16x16xf32, #tpu.memory_space<vmem>>, vector<2x16x16xf32>,
    } else {
    }
    %c0 = arith.constant 0 : index
    %c0_1 = arith.constant 0 : index
    %c0_2 = arith.constant 0 : index
    %3 = vector.load %arg3[%c0, %c0_1, %c0_2] : memref<1x16x32xf32, #tpu.memory_space<vmem>>, vector<1x16x32xf32>
    %4 = vector.shape_cast %3 : vector<1x16x32xf32> to vector<16x32xf32>
    %c0_3 = arith.constant 0 : index
    %c0_4 = arith.constant 0 : index
    %c0_5 = arith.constant 0 : index
    %5 = vector.load %arg4[%c0_3, %c0_4, %c0_5] : memref<1x8x64xf32, #tpu.memory_space<vmem>>, vector<1x8x64xf32>
    %6 = vector.shape_cast %5 : vector<1x8x64xf32> to vector<8x64xf32>
    %7 = vector.extract_strided_slice %6 {offsets = [0, 0], sizes = [8, 32], strides = [1, 1]} : vector<8x64xf32> to vector<8x32xf32>
    %8 = vector.extract_strided_slice %6 {offsets = [0, 32], sizes = [8, 32], strides = [1, 1]} : vector<8x64xf32> to vector<8x32xf32>
    %9 = vector.extract_strided_slice %4 {offsets = [0, 0], sizes = [16, 16], strides = [1, 1]} : vector<16x32xf32> to vector<16x16xf32>
    %10 = vector.extract_strided_slice %7 {offsets = [0, 0], sizes = [8, 16], strides = [1, 1]} : vector<8x32xf32> to vector<8x16xf32>
    %11 = vector.extract_strided_slice %8 {offsets = [0, 0], sizes = [8, 16], strides = [1, 1]} : vector<8x32xf32> to vector<8x16xf32>
    %cst = arith.constant dense<0.000000e+00> : vector<16x8xf32>
    %12 = tpu.matmul %9, %10, %cst {dimension_numbers = #tpu.dot_dimension_numbers<[1], [1], [0], [0], [0, 0, 1, 0], [], []>} : vector<16x16xf32>, vector<8x16xf32>, vector<16x8xf32> -> vector<16x8xf32>
    %c0_6 = arith.constant 0 : index
    %c0_7 = arith.constant 0 : index
    %c0_8 = arith.constant 0 : index
    %13 = vector.load %arg8[%c0_6, %c0_7, %c0_8] : memref<2x16x1xf32, #tpu.memory_space<vmem>>, vector<1x16x1xf32>
    %14 = vector.shape_cast %13 : vector<1x16x1xf32> to vector<16x1xf32>
    %cst_9 = arith.constant dense<0xFF800000> : vector<16xf32>
    %15 = vector.multi_reduction <maximumf>, %12, %cst_9 [1] : vector<16x8xf32> to vector<16xf32>
    %16 = vector.shape_cast %15 : vector<16xf32> to vector<16x1xf32>
    %17 = arith.maximumf %14, %16 : vector<16x1xf32>
    %18 = arith.subf %14, %17 : vector<16x1xf32>
    %19 = math.exp %18 : vector<16x1xf32>
    %20 = vector.broadcast %17 : vector<16x1xf32> to vector<16x8xf32>
    %21 = arith.subf %12, %20 : vector<16x8xf32>
    %22 = math.exp %21 : vector<16x8xf32>
    %c0_10 = arith.constant 0 : index
    %c0_11 = arith.constant 0 : index
    %c0_12 = arith.constant 0 : index
    %23 = vector.load %arg9[%c0_10, %c0_11, %c0_12] : memref<2x16x1xf32, #tpu.memory_space<vmem>>, vector<1x16x1xf32>
    %24 = vector.shape_cast %23 : vector<1x16x1xf32> to vector<16x1xf32>
    %25 = arith.mulf %19, %24 : vector<16x1xf32>
    %cst_13 = arith.constant dense<0.000000e+00> : vector<16xf32>
    %26 = vector.multi_reduction <add>, %22, %cst_13 [1] : vector<16x8xf32> to vector<16xf32>
    %27 = vector.shape_cast %26 : vector<16xf32> to vector<16x1xf32>
    %28 = arith.addf %25, %27 : vector<16x1xf32>
    %c0_14 = arith.constant 0 : index
    %c0_15 = arith.constant 0 : index
    %c0_16 = arith.constant 0 : index
    %29 = vector.load %arg9[%c0_14, %c0_15, %c0_16] : memref<2x16x1xf32, #tpu.memory_space<vmem>>, vector<1x16x1xf32>
    %30 = vector.shape_cast %29 : vector<1x16x1xf32> to vector<16x1xf32>
    %31 = vector.shape_cast %28 : vector<16x1xf32> to vector<1x16x1xf32>
    tpu.vector_store %arg9[%c0_14, %c0_15, %c0_16], %31 {strides = array<i32>} : memref<2x16x1xf32, #tpu.memory_space<vmem>>, vector<1x16x1xf32>,
    %c0_17 = arith.constant 0 : index
    %c0_18 = arith.constant 0 : index
    %c0_19 = arith.constant 0 : index
    %32 = vector.load %arg10[%c0_17, %c0_18, %c0_19] : memref<2x16x16xf32, #tpu.memory_space<vmem>>, vector<1x16x16xf32>
    %33 = vector.shape_cast %32 : vector<1x16x16xf32> to vector<16x16xf32>
    %34 = vector.broadcast %19 : vector<16x1xf32> to vector<16x16xf32>
    %35 = arith.mulf %34, %33 : vector<16x16xf32>
    %cst_20 = arith.constant dense<0.000000e+00> : vector<16x16xf32>
    %36 = tpu.matmul %22, %11, %cst_20 {dimension_numbers = #tpu.dot_dimension_numbers<[1], [0], [0], [1], [0, 0, 1, 1], [], []>} : vector<16x8xf32>, vector<8x16xf32>, vector<16x16xf32> -> vector<16x16xf32>
    %37 = arith.addf %35, %36 : vector<16x16xf32>
    %c0_21 = arith.constant 0 : index
    %c0_22 = arith.constant 0 : index
    %c0_23 = arith.constant 0 : index
    %38 = vector.load %arg10[%c0_21, %c0_22, %c0_23] : memref<2x16x16xf32, #tpu.memory_space<vmem>>, vector<1x16x16xf32>
    %39 = vector.shape_cast %38 : vector<1x16x16xf32> to vector<16x16xf32>
    %40 = vector.shape_cast %37 : vector<16x16xf32> to vector<1x16x16xf32>
    tpu.vector_store %arg10[%c0_21, %c0_22, %c0_23], %40 {strides = array<i32>} : memref<2x16x16xf32, #tpu.memory_space<vmem>>, vector<1x16x16xf32>,
    %c0_24 = arith.constant 0 : index
    %c0_25 = arith.constant 0 : index
    %c0_26 = arith.constant 0 : index
    %41 = vector.load %arg8[%c0_24, %c0_25, %c0_26] : memref<2x16x1xf32, #tpu.memory_space<vmem>>, vector<1x16x1xf32>
    %42 = vector.shape_cast %41 : vector<1x16x1xf32> to vector<16x1xf32>
    %43 = vector.shape_cast %17 : vector<16x1xf32> to vector<1x16x1xf32>
    tpu.vector_store %arg8[%c0_24, %c0_25, %c0_26], %43 {strides = array<i32>} : memref<2x16x1xf32, #tpu.memory_space<vmem>>, vector<1x16x1xf32>,
    %44 = vector.extract_strided_slice %4 {offsets = [0, 16], sizes = [16, 16], strides = [1, 1]} : vector<16x32xf32> to vector<16x16xf32>
    %45 = vector.extract_strided_slice %7 {offsets = [0, 16], sizes = [8, 16], strides = [1, 1]} : vector<8x32xf32> to vector<8x16xf32>
    %46 = vector.extract_strided_slice %8 {offsets = [0, 16], sizes = [8, 16], strides = [1, 1]} : vector<8x32xf32> to vector<8x16xf32>
    %cst_27 = arith.constant dense<0.000000e+00> : vector<16x8xf32>
    %47 = tpu.matmul %44, %45, %cst_27 {dimension_numbers = #tpu.dot_dimension_numbers<[1], [1], [0], [0], [0, 0, 1, 0], [], []>} : vector<16x16xf32>, vector<8x16xf32>, vector<16x8xf32> -> vector<16x8xf32>
    %c1 = arith.constant 1 : index
    %c0_28 = arith.constant 0 : index
    %c0_29 = arith.constant 0 : index
    %48 = vector.load %arg8[%c1, %c0_28, %c0_29] : memref<2x16x1xf32, #tpu.memory_space<vmem>>, vector<1x16x1xf32>
    %49 = vector.shape_cast %48 : vector<1x16x1xf32> to vector<16x1xf32>
    %cst_30 = arith.constant dense<0xFF800000> : vector<16xf32>
    %50 = vector.multi_reduction <maximumf>, %47, %cst_30 [1] : vector<16x8xf32> to vector<16xf32>
    %51 = vector.shape_cast %50 : vector<16xf32> to vector<16x1xf32>
    %52 = arith.maximumf %49, %51 : vector<16x1xf32>
    %53 = arith.subf %49, %52 : vector<16x1xf32>
    %54 = math.exp %53 : vector<16x1xf32>
    %55 = vector.broadcast %52 : vector<16x1xf32> to vector<16x8xf32>
    %56 = arith.subf %47, %55 : vector<16x8xf32>
    %57 = math.exp %56 : vector<16x8xf32>
    %c1_31 = arith.constant 1 : index
    %c0_32 = arith.constant 0 : index
    %c0_33 = arith.constant 0 : index
    %58 = vector.load %arg9[%c1_31, %c0_32, %c0_33] : memref<2x16x1xf32, #tpu.memory_space<vmem>>, vector<1x16x1xf32>
    %59 = vector.shape_cast %58 : vector<1x16x1xf32> to vector<16x1xf32>
    %60 = arith.mulf %54, %59 : vector<16x1xf32>
    %cst_34 = arith.constant dense<0.000000e+00> : vector<16xf32>
    %61 = vector.multi_reduction <add>, %57, %cst_34 [1] : vector<16x8xf32> to vector<16xf32>
    %62 = vector.shape_cast %61 : vector<16xf32> to vector<16x1xf32>
    %63 = arith.addf %60, %62 : vector<16x1xf32>
    %c1_35 = arith.constant 1 : index
    %c0_36 = arith.constant 0 : index
    %c0_37 = arith.constant 0 : index
    %64 = vector.load %arg9[%c1_35, %c0_36, %c0_37] : memref<2x16x1xf32, #tpu.memory_space<vmem>>, vector<1x16x1xf32>
    %65 = vector.shape_cast %64 : vector<1x16x1xf32> to vector<16x1xf32>
    %66 = vector.shape_cast %63 : vector<16x1xf32> to vector<1x16x1xf32>
    tpu.vector_store %arg9[%c1_35, %c0_36, %c0_37], %66 {strides = array<i32>} : memref<2x16x1xf32, #tpu.memory_space<vmem>>, vector<1x16x1xf32>,
    %c1_38 = arith.constant 1 : index
    %c0_39 = arith.constant 0 : index
    %c0_40 = arith.constant 0 : index
    %67 = vector.load %arg10[%c1_38, %c0_39, %c0_40] : memref<2x16x16xf32, #tpu.memory_space<vmem>>, vector<1x16x16xf32>
    %68 = vector.shape_cast %67 : vector<1x16x16xf32> to vector<16x16xf32>
    %69 = vector.broadcast %54 : vector<16x1xf32> to vector<16x16xf32>
    %70 = arith.mulf %69, %68 : vector<16x16xf32>
    %cst_41 = arith.constant dense<0.000000e+00> : vector<16x16xf32>
    %71 = tpu.matmul %57, %46, %cst_41 {dimension_numbers = #tpu.dot_dimension_numbers<[1], [0], [0], [1], [0, 0, 1, 1], [], []>} : vector<16x8xf32>, vector<8x16xf32>, vector<16x16xf32> -> vector<16x16xf32>
    %72 = arith.addf %70, %71 : vector<16x16xf32>
    %c1_42 = arith.constant 1 : index
    %c0_43 = arith.constant 0 : index
    %c0_44 = arith.constant 0 : index
    %73 = vector.load %arg10[%c1_42, %c0_43, %c0_44] : memref<2x16x16xf32, #tpu.memory_space<vmem>>, vector<1x16x16xf32>
    %74 = vector.shape_cast %73 : vector<1x16x16xf32> to vector<16x16xf32>
    %75 = vector.shape_cast %72 : vector<16x16xf32> to vector<1x16x16xf32>
    tpu.vector_store %arg10[%c1_42, %c0_43, %c0_44], %75 {strides = array<i32>} : memref<2x16x16xf32, #tpu.memory_space<vmem>>, vector<1x16x16xf32>,
    %c1_45 = arith.constant 1 : index
    %c0_46 = arith.constant 0 : index
    %c0_47 = arith.constant 0 : index
    %76 = vector.load %arg8[%c1_45, %c0_46, %c0_47] : memref<2x16x1xf32, #tpu.memory_space<vmem>>, vector<1x16x1xf32>
    %77 = vector.shape_cast %76 : vector<1x16x1xf32> to vector<16x1xf32>
    %78 = vector.shape_cast %52 : vector<16x1xf32> to vector<1x16x1xf32>
    tpu.vector_store %arg8[%c1_45, %c0_46, %c0_47], %78 {strides = array<i32>} : memref<2x16x1xf32, #tpu.memory_space<vmem>>, vector<1x16x1xf32>,
    %c0_i32_48 = arith.constant 0 : i32
    %79 = arith.cmpi eq, %arg2, %c0_i32_48 : i32
    %80 = arith.extui %79 : i1 to i32
    %c0_i32_49 = arith.constant 0 : i32
    %81 = arith.cmpi ne, %80, %c0_i32_49 : i32
    scf.if %81 {
      %c0_50 = arith.constant 0 : index
      %c0_51 = arith.constant 0 : index
      %82 = vector.load %arg5[%c0_50, %c0_51] : memref<32x32xf32, #tpu.memory_space<vmem>>, vector<32x32xf32>
      %c0_52 = arith.constant 0 : index
      %c0_53 = arith.constant 0 : index
      %c0_54 = arith.constant 0 : index
      %83 = vector.load %arg9[%c0_52, %c0_53, %c0_54] : memref<2x16x1xf32, #tpu.memory_space<vmem>>, vector<1x16x1xf32>
      %84 = vector.shape_cast %83 : vector<1x16x1xf32> to vector<16x1xf32>
      %85 = tpu.reciprocal %84 {approx = true} : vector<16x1xf32> -> vector<16x1xf32>
      %86 = arith.mulf %84, %85 : vector<16x1xf32>
      %cst_55 = arith.constant 2.000000e+00 : f32
      %87 = vector.broadcast %cst_55 : f32 to vector<16x1xf32>
      %88 = arith.subf %87, %86 : vector<16x1xf32>
      %89 = arith.mulf %85, %88 : vector<16x1xf32>
      %c0_56 = arith.constant 0 : index
      %c0_57 = arith.constant 0 : index
      %c0_58 = arith.constant 0 : index
      %90 = vector.load %arg10[%c0_56, %c0_57, %c0_58] : memref<2x16x16xf32, #tpu.memory_space<vmem>>, vector<1x16x16xf32>
      %91 = vector.shape_cast %90 : vector<1x16x16xf32> to vector<16x16xf32>
      %92 = vector.broadcast %89 : vector<16x1xf32> to vector<16x16xf32>
      %93 = arith.mulf %91, %92 : vector<16x16xf32>
      %94 = vector.extract_strided_slice %82 {offsets = [0, 0], sizes = [16, 32], strides = [1, 1]} : vector<32x32xf32> to vector<16x32xf32>
      %cst_59 = arith.constant dense<0.000000e+00> : vector<16x32xf32>
      %95 = tpu.matmul %93, %94, %cst_59 {dimension_numbers = #tpu.dot_dimension_numbers<[1], [0], [0], [1], [0, 0, 1, 1], [], []>} : vector<16x16xf32>, vector<16x32xf32>, vector<16x32xf32> -> vector<16x32xf32>
      %c1_60 = arith.constant 1 : index
      %c0_61 = arith.constant 0 : index
      %c0_62 = arith.constant 0 : index
      %96 = vector.load %arg9[%c1_60, %c0_61, %c0_62] : memref<2x16x1xf32, #tpu.memory_space<vmem>>, vector<1x16x1xf32>
      %97 = vector.shape_cast %96 : vector<1x16x1xf32> to vector<16x1xf32>
      %98 = tpu.reciprocal %97 {approx = true} : vector<16x1xf32> -> vector<16x1xf32>
      %99 = arith.mulf %97, %98 : vector<16x1xf32>
      %cst_63 = arith.constant 2.000000e+00 : f32
      %100 = vector.broadcast %cst_63 : f32 to vector<16x1xf32>
      %101 = arith.subf %100, %99 : vector<16x1xf32>
      %102 = arith.mulf %98, %101 : vector<16x1xf32>
      %c1_64 = arith.constant 1 : index
      %c0_65 = arith.constant 0 : index
      %c0_66 = arith.constant 0 : index
      %103 = vector.load %arg10[%c1_64, %c0_65, %c0_66] : memref<2x16x16xf32, #tpu.memory_space<vmem>>, vector<1x16x16xf32>
      %104 = vector.shape_cast %103 : vector<1x16x16xf32> to vector<16x16xf32>
      %105 = vector.broadcast %102 : vector<16x1xf32> to vector<16x16xf32>
      %106 = arith.mulf %104, %105 : vector<16x16xf32>
      %107 = vector.extract_strided_slice %82 {offsets = [16, 0], sizes = [16, 32], strides = [1, 1]} : vector<32x32xf32> to vector<16x32xf32>
      %cst_67 = arith.constant dense<0.000000e+00> : vector<16x32xf32>
      %108 = tpu.matmul %106, %107, %cst_67 {dimension_numbers = #tpu.dot_dimension_numbers<[1], [0], [0], [1], [0, 0, 1, 1], [], []>} : vector<16x16xf32>, vector<16x32xf32>, vector<16x32xf32> -> vector<16x32xf32>
      %109 = arith.addf %95, %108 : vector<16x32xf32>
      %c0_68 = arith.constant 0 : index
      %c0_69 = arith.constant 0 : index
      %110 = vector.load %arg6[%c0_68, %c0_69] : memref<1x32xf32, #tpu.memory_space<vmem>>, vector<1x32xf32>
      %111 = vector.broadcast %110 : vector<1x32xf32> to vector<16x32xf32>
      %112 = arith.addf %109, %111 : vector<16x32xf32>
      %c0_70 = arith.constant 0 : index
      %c0_71 = arith.constant 0 : index
      %c0_72 = arith.constant 0 : index
      %113 = vector.load %arg7[%c0_70, %c0_71, %c0_72] : memref<1x16x32xf32, #tpu.memory_space<vmem>>, vector<1x16x32xf32>
      %114 = vector.shape_cast %113 : vector<1x16x32xf32> to vector<16x32xf32>
      %115 = vector.shape_cast %112 : vector<16x32xf32> to vector<1x16x32xf32>
      tpu.vector_store %arg7[%c0_70, %c0_71, %c0_72], %115 {strides = array<i32>} : memref<1x16x32xf32, #tpu.memory_space<vmem>>, vector<1x16x32xf32>,
    } else {
    }
    return
  }
  func.func @transform_0(%arg0: i32, %arg1: i32, %arg2: i32) -> (i32, i32, i32) {
    %c0_i32 = arith.constant 0 : i32
    %c0_i32_0 = arith.constant 0 : i32
    return %arg0, %arg1, %c0_i32 : i32, i32, i32
  }
  func.func @transform_1(%arg0: i32, %arg1: i32, %arg2: i32) -> (i32, i32, i32) {
    %c0_i32 = arith.constant 0 : i32
    %c0_i32_0 = arith.constant 0 : i32
    return %arg0, %arg2, %c0_i32 : i32, i32, i32
  }
  func.func @transform_2(%arg0: i32, %arg1: i32, %arg2: i32) -> (i32, i32) {
    %c0_i32 = arith.constant 0 : i32
    %c0_i32_0 = arith.constant 0 : i32
    %c0_i32_1 = arith.constant 0 : i32
    return %c0_i32, %c0_i32_0 : i32, i32
  }
  func.func @transform_3(%arg0: i32, %arg1: i32, %arg2: i32) -> (i32, i32) {
    %c0_i32 = arith.constant 0 : i32
    %c0_i32_0 = arith.constant 0 : i32
    %c0_i32_1 = arith.constant 0 : i32
    return %c0_i32, %c0_i32_0 : i32, i32
  }
  func.func @transform_4(%arg0: i32, %arg1: i32, %arg2: i32) -> (i32, i32, i32) {
    %c0_i32 = arith.constant 0 : i32
    %c0_i32_0 = arith.constant 0 : i32
    return %arg0, %arg1, %c0_i32 : i32, i32, i32
  }
}

</mosaic_0001>

<bundles_post_ra>
// kernel: cross_attention_forward.3
= control target key start
LH: loop header
LB: loop body
LE: loop exit
PB: predicated region body
PF: predicated region fallthrough
CT: control target
= control target key end

     0   :  { %vm19_vm0 = vcmask 261120   ;;  %s222_s1 = inlined_call_operand.vmem [shape: f32[32,32], index: 1, kind: input, shape index: {}]   ;;  %s223_s0 = inlined_call_operand.vmem [shape: f32[32,32], index: 0, kind: input, shape index: {}]   ;;  %s224_s2 = inlined_call_operand.vmem [shape: f32[32,32], index: 2, kind: output, shape index: {}]  }
   0x1   :  { %v15_v0 = vld [vmem:[%s222_s1] sm:$0xff]  ;;  %v16_v1 = vld [vmem:[%s222_s1 + $0x8] sm:$0xff]  ;;  %v17_v2 = vld [vmem:[%s222_s1 + $0x10] sm:$0xff] }
   0x2   :  { %v151_v3 = vpack.c.bf16 %v16_v1, %v15_v0  ;;  %v18_v4 = vld [vmem:[%s222_s1 + $0x18] sm:$0xff]  ;;  %v11_v5 = vld [vmem:[%s223_s0] sm:$0xff]  ;;  %v13_v6 = vld [vmem:[%s223_s0 + $0x10] sm:$0xff] }
   0x3   :  { %v155_v7 = vpack.c.bf16 %v18_v4, %v17_v2  ;;  %145 = vmatprep.mubr.msk.f32.mxu0 %vm19_vm0, %v11_v5  ;;  %148 = vmatprep.mubr.msk.f32.mxu1 %vm19_vm0, %v13_v6  ;;  %v12_v8 = vld [vmem:[%s223_s0 + $0x8] sm:$0xff]  ;;  %v14_v9 = vld [vmem:[%s223_s0 + $0x18] sm:$0xff] }
   0x4   :  { %152 = vmatprep.subr.bf16.mxu0 %v151_v3  ;;  %159 = vmatprep.subr.bf16.mxu1 %v151_v3 }
   0x5   :  { %154 = vmatpush3.bf16.msra.mxu0 %v151_v3  ;;  %161 = vmatpush3.bf16.msra.mxu1 %v151_v3 }
   0x6   :  { %156 = vmatprep.subr.bf16.mxu0 %v155_v7  ;;  %160 = vmatprep.subr.bf16.mxu1 %v155_v7 }
   0x9   :  { %158 = vmatpush3.bf16.msra.mxu0 %v155_v7  ;;  %162 = vmatpush3.bf16.msra.mxu1 %v155_v7 }
   0xc   :  { %146 = vmatmul.mubr.msk.f32.vlgmr.msra.gmra.mrb[0].mxu0 %vm19_vm0, %v12_v8  ;;  %149 = vmatmul.mubr.msk.f32.vlgmr.msra.gmra.mrb[0].mxu1 %vm19_vm0, %v14_v9 }
  0xdf   :  { %v147_v10 = vpop.f32.mrb[0].mxu0  ;;  %v150_v11 = vpop.f32.mrb[0].mxu1 }
  0xe0   :  { %118 = vst.msk [vmem:[%s224_s2 + $0x8] sm:$0xff] %vm19_vm0, %v147_v10  ;;  %120 = vst.msk [vmem:[%s224_s2 + $0x18] sm:$0xff] %vm19_vm0, %v150_v11  ;;  %v98_v12 = vpop.f32.mrb[1].mxu0  ;;  %v108_v13 = vpop.f32.mrb[1].mxu1 }
  0xe1   :  { %117 = vst.msk [vmem:[%s224_s2] sm:$0xff] %vm19_vm0, %v98_v12  ;;  %119 = vst.msk [vmem:[%s224_s2 + $0x10] sm:$0xff] %vm19_vm0, %v108_v13 }

// kernel: cross_attention_forward.4
= control target key start
LH: loop header
LB: loop body
LE: loop exit
PB: predicated region body
PF: predicated region fallthrough
CT: control target
= control target key end

     0   :  { %7 = vsyncpa [#allocation3], 0  ;;  %s264_s0 = inlined_call_operand.hbm [shape: f32[16,32], index: 0, kind: input, shape index: {}]   ;;  %s265_s1 = inlined_call_operand.hbm [shape: f32[32,64], index: 1, kind: input, shape index: {}]   ;;  %s266_s2 = inlined_call_operand.vmem [shape: f32[16,64], index: 2, kind: output, shape index: {}]  }
   0x1   :  { %8 = vsyncpa [#allocation5], 0  ;;  %s215_s9 = smov [#allocation2]   ;;  %s167_s13 = scalar_lea.hbm %s264_s0, 256 }
   0x2   :  { %s14_s10 = sshll.u32 %s215_s9, 4  ;;  %p168_p0 = scmp.ne.s32.totalorder %s264_s0, %s167_s13  ;;  %s15_s10 = int_to_ptr.vmem [resolvable:$true] %s14_s10 }
   0x3   :  { %p171_p1 = scmp.lt.u32.totalorder %s167_s13, %s264_s0 }
   0x5   :  { %p173_p2 = pnand %p171_p1, %p168_p0 }
   0x7   :  { %176 = shalt.err (!%p173_p2)
}
   0x8   :  { %s177_s18 = scalar_lea.vmem %s15_s10, 256  ;;  %p182_p4 = scmp.lt.s32.totalorder %s15_s10, %s15_s10 }
   0x9   :  { %p178_p3 = scmp.ne.s32.totalorder %s15_s10, %s177_s18  ;;  %p183_p5 = scmp.lt.s32.totalorder %s177_s18, %s177_s18 }
   0xb   :  { %p184_p6 = por %p183_p5, %p182_p4 }
   0xd   :  { %p185_p7 = pnand %p184_p6, %p178_p3 }
   0xf   :  { %188 = shalt.err (!%p185_p7)
}
  0x10   :  { %s216_s19 = smov 128   ;;  %s217_s20 = smov 8  }
  0x11   :  { %20 = dma.hbm_to_vmem [thread:$0]  %s264_s0, 256, %s15_s10, [#allocation3], %s216_s19, %s216_s19, %s217_s20  }
  0x12   :  { %s218_s23 = smov [#allocation4]   ;;  %s189_s27 = scalar_lea.hbm %s265_s1, 512 }
  0x13   :  { %s26_s24 = sshll.u32 %s218_s23, 4  ;;  %p190_p8 = scmp.ne.s32.totalorder %s265_s1, %s189_s27  ;;  %s27_s24 = int_to_ptr.vmem [resolvable:$true] %s26_s24 }
  0x14   :  { %p193_p9 = scmp.lt.u32.totalorder %s189_s27, %s265_s1 }
  0x16   :  { %p195_p10 = pnand %p193_p9, %p190_p8 }
  0x18   :  { %198 = shalt.err (!%p195_p10)
}
  0x19   :  { %s199_s4 = scalar_lea.vmem %s27_s24, 512  ;;  %p204_p12 = scmp.lt.s32.totalorder %s27_s24, %s27_s24 }
  0x1a   :  { %p200_p11 = scmp.ne.s32.totalorder %s27_s24, %s199_s4  ;;  %p205_p13 = scmp.lt.s32.totalorder %s199_s4, %s199_s4 }
  0x1c   :  { %p206_p0 = por %p205_p13, %p204_p12 }
  0x1e   :  { %p207_p1 = pnand %p206_p0, %p200_p11 }
  0x20   :  { %210 = shalt.err (!%p207_p1)
}
  0x21   :  { %32 = dma.hbm_to_vmem [thread:$0]  %s265_s1, 512, %s27_s24, [#allocation5], %s216_s19, %s216_s19, %s217_s20  }
  0x22   :  { %211 = dma.done.wait [#allocation3], 256  }
  0x23   :  { %212 = vsyncadd [#allocation3], 4294967040 }
  0x24   :  { %213 = dma.done.wait [#allocation5], 512  }
  0x25   :  { %214 = vsyncadd [#allocation5], 4294966784  ;;  %vm45_vm0 = vcmask 261120   ;;  %v41_v0 = vld [vmem:[#allocation4] sm:$0xff]  ;;  %v42_v1 = vld [vmem:[#allocation4 + $0x8] sm:$0xff]  ;;  %vm127_vm1 = vcmask 523264  }
  0x26   :  { %v43_v2 = vld [vmem:[#allocation4 + $0x10] sm:$0xff]  ;;  %v155_v3 = vpack.c.bf16 %v42_v1, %v41_v0  ;;  %v44_v4 = vld [vmem:[#allocation4 + $0x18] sm:$0xff] }
  0x27   :  { %v39_v5 = vld [vmem:[#allocation2] sm:$0xff]  ;;  %v159_v6 = vpack.c.bf16 %v44_v4, %v43_v2  ;;  %v40_v7 = vld [vmem:[#allocation2 + $0x8] sm:$0xff] }
  0x28   :  { %152 = vmatprep.mubr.msk.f32.mxu0 %vm45_vm0, %v39_v5  ;;  %156 = vmatprep.subr.bf16.mxu0 %v155_v3 }
  0x29   :  { %158 = vmatpush3.bf16.msra.mxu0 %v155_v3 }
  0x2a   :  { %160 = vmatprep.subr.bf16.mxu0 %v159_v6 }
  0x2d   :  { %162 = vmatpush3.bf16.msra.mxu0 %v159_v6 }
  0x30   :  { %153 = vmatmul.mubr.msk.f32.vlgmr.msra.gmra.mrb[0].mxu0 %vm45_vm0, %v40_v7 }
 0x103   :  { %v154_v8 = vpop.f32.mrb[0].mxu0 }
 0x104   :  { %129 = vst.msk [vmem:[%s266_s2 + $0x8] sm:$0xff] %vm127_vm1, %v154_v8  ;;  %v118_v9 = vpop.f32.mrb[1].mxu0 }
 0x105   :  { %128 = vst.msk [vmem:[%s266_s2] sm:$0xff] %vm127_vm1, %v118_v9 }
 0x106   :  { %134 = vsyncpa [#allocation3], 1 }
 0x107   :  { %135 = vsyncpa [#allocation5], 1 }

// kernel: cross_attention_forward.5
= control target key start
LH: loop header
LB: loop body
LE: loop exit
PB: predicated region body
PF: predicated region fallthrough
CT: control target
= control target key end

     0   :  { %9 = vsyncpa [#allocation6], 0  ;;  %s1609_s0 = inlined_call_operand.vmem [shape: f32[2,16,32], index: 0, kind: input, shape index: {}]   ;;  %s1610_s1 = inlined_call_operand.vmem [shape: f32[2,8,64], index: 1, kind: input, shape index: {}]   ;;  %s1611_s2 = inlined_call_operand.vmem [shape: f32[32,32], index: 2, kind: input, shape index: {}]   ;;  %s1612_s3 = inlined_call_operand.vmem [shape: f32[1,32], index: 3, kind: input, shape index: {}]   ;;  %s1613_s4 = inlined_call_operand.hbm [shape: f32[2,16,32], index: 4, kind: output, shape index: {}]  }
   0x1   :  { %11 = vsyncpa [#allocation6 + $0x1], 0  ;;  %s1400_s15 = smov 0   ;;  %s1402_s16 = smov 0  }
   0x2   :  { %s1404_s17 = smov 0   ;;  %s1406_s18 = smov 0  }
   0x3   :  { %s1408_s19 = smov 0   ;;  %s1410_s20 = smov 0  }
   0x4 LB: > { %s1102_s21 = sadd.s32 4294967295, %s1364_s20   ;;  %s1103_s22 = sadd.s32 4294967294, %s1364_s20   ;;  %s1364_s20 = sphi %s1410_s20, %s17_s20   ;;  %s1360_s19 = sphi %s1408_s19, %s1620_s19   ;;  %s1356_s18 = sphi %s1406_s18, %s1619_s18   ;;  %s1352_s17 = sphi %s1404_s17, %s1618_s17   ;;  %s1348_s16 = sphi %s1402_s16, %s1617_s16   ;;  %s1344_s15 = sphi %s1400_s15, %s1616_s15  }
   0x5   : > { %s36_s23 = sadd.s32 1, %s1360_s19  ;;  %s143_s24 = sadd.s32 1, %s1352_s17 }
   0x6   : > { %p38_p0 = scmp.ge.s32.totalorder %s36_s23, 2  ;;  %p153_p1 = scmp.ne.s32.totalorder %s1352_s17, %s1348_s16 }
   0x7   : > { %p154_p2 = scmp.eq.s32.totalorder %s1102_s21, 1  ;;  %p159_p3 = scmp.ne.s32.totalorder %s1348_s16, %s1344_s15 }
   0x8   : > { %s1622_s23 = smov (%p38_p0, %s36_s23), 0  ;;  %p160_p5 = scmp.eq.s32.totalorder %s1103_s22, 1 }
   0x9   : > { %p1440_p4 = por %p154_p2, %p153_p1  ;;  %s138_s26 = ssub.s32 %s1360_s19, %s1622_s23 }
   0xa   : > { %p1106_p6 = scmp.ge.s32.totalorder %s1364_s20, 1  ;;  %p141_p7 = scmp.eq.s32.totalorder %s138_s26, 0 }
   0xb   : > { %p1447_p8 = por %p160_p5, %p159_p3  ;;  %p207_p9 = scmp.lt.s32.totalorder %s1364_s20, 3 }
   0xc   : > { %s1453_s28 = scalar_select %p141_p7, %s1352_s17, %s143_s24  }
   0xd   : > { %p208_p10 = pnand %p1106_p6, %p207_p9 }
   0xe   : > { %p245_p11 = scmp.lt.s32.totalorder (!%p208_p10), %s1356_s18, 1  ;;  %vm275_vm0 = vcmask (!%p208_p10), 130048   ;;  %s1366_s12 = smov (!%p208_p10), 112   ;;  %vm266_vm1 = vcmask (!%p208_p10), 7168   ;;  %v1367_v6 = vmov (!%p208_p10), -inf   ;;  %vm370_vm2 = vcmask (!%p208_p10), 64512  }
   0xf   : > { %211 = sbr.rel (%p208_p10) target bundleno = 1190 (0x4a6), region = 36  ;;  %268 = vst.msk [vmem:[#allocation2 + $0x8] sm:$0xff] (!%p208_p10), %vm266_vm1, %v1367_v6  ;;  %267 = vst.msk [vmem:[#allocation2] sm:$0xff] (!%p208_p10), %vm266_vm1, %v1367_v6  ;;  %v1368_v11 = vmov (!%p208_p10), 0   ;;  %v1369_v16 = vmov (!%p208_p10), 0.0   ;;  %s1370_s13 = smov (!%p208_p10), 96  }
  0x10   : > { %269 = vst.msk [vmem:[#allocation2 + $0x10] sm:$0xff] (!%p208_p10), %vm266_vm1, %v1367_v6  ;;  %270 = vst.msk [vmem:[#allocation2 + $0x18] sm:$0xff] (!%p208_p10), %vm266_vm1, %v1367_v6  ;;  %1261 = vset.pattern.permute.xlu1 (!%p208_p10), %v1368_v11  ;;  %1260 = vset.pattern.permute.xlu0 (!%p208_p10), %v1368_v11  ;;  %s1371_s14 = smov (!%p208_p10), 80   ;;  %s241_s7 = sand.u32 (!%p208_p10), 1, %s1348_s16   ;;  %vm986_vm3 = vcmask (!%p208_p10), 261120  }
  0x11   : > { %273 = vst.msk [vmem:[#allocation3 + $0x10] sm:$0xff] (!%p208_p10), %vm266_vm1, %v1369_v16  ;;  %271 = vst.msk [vmem:[#allocation3] sm:$0xff] (!%p208_p10), %vm266_vm1, %v1369_v16  ;;  %s1563_s24 = scalar_lea.sflag (!%p208_p10), [#allocation6], %s241_s7  ;;  %s1372_s26 = smov (!%p208_p10), [#allocation5]  }
  0x12   : > { %272 = vst.msk [vmem:[#allocation3 + $0x8] sm:$0xff] (!%p208_p10), %vm266_vm1, %v1369_v16  ;;  %274 = vst.msk [vmem:[#allocation3 + $0x18] sm:$0xff] (!%p208_p10), %vm266_vm1, %v1369_v16 }
  0x13   : > { %276 = vst.msk [vmem:[#allocation4] sm:$0xff] (!%p208_p10), %vm275_vm0, %v1369_v16  ;;  %277 = vst.msk [vmem:[#allocation4 + $0x8] sm:$0xff] (!%p208_p10), %vm275_vm0, %v1369_v16 }
  0x14   : > { %278 = vst.msk [vmem:[#allocation4 + $0x10] sm:$0xff] (!%p208_p10), %vm275_vm0, %v1369_v16  ;;  %279 = vst.msk [vmem:[#allocation4 + $0x18] sm:$0xff] (!%p208_p10), %vm275_vm0, %v1369_v16 }
  0x16   : > { %s246_s29 = scalar_select %p245_p11, %s1356_s18, 1  ;;  %v1492_v17 = vld [vmem:[#allocation2 + $0x8] sm:$0xff]  ;;  %v1494_v18 = vld [vmem:[#allocation2] sm:$0xff] }
  0x17   : > { %v609_v25 = vld [vmem:[#allocation2 + $0x18] sm:$0xff]  ;;  %v608_v26 = vld [vmem:[#allocation2 + $0x10] sm:$0xff] }
  0x18   : > { %s1110_s30 = sshll.u32 %s246_s29, 3  ;;  %s1131_s5 = sshll.u32 %s246_s29, 4  ;;  %v641_v63 = vld [vmem:[#allocation3 + $0x10] sm:$0xff] }
  0x19   : > { %s260_s8 = scalar_lea.vmem %s1610_s1, %s1110_s30  ;;  %s252_s11 = scalar_lea.vmem %s1609_s0, %s1131_s5 }
  0x1a   : > { %v1463_v0 = vld [vmem:[%s260_s8] sm:$0xff]  ;;  %v281_v2 = vld [vmem:[%s252_s11 + $0x8] sm:$0xff]  ;;  %s1107_s8 = sshll.u32 %s241_s7, 4  ;;  %s1290_s29 = sshll.u32 %s1372_s26, 4  ;;  %s1291_s29 = int_to_ptr.vmem [resolvable:$false] %s1290_s29 }
  0x1b   : > { %v280_v1 = vld [vmem:[%s252_s11] sm:$0xff]  ;;  %524 = vrot.lane.b32.xlu0 %v1463_v0, %s1366_s12  ;;  %1153 = vmatprep.subr.msk.mxu0 %vm275_vm0, %v1463_v0  ;;  %s243_s11 = scalar_lea.vmem [#allocation5], %s1107_s8  ;;  %s1292_s30 = scalar_lea.vmem %s1291_s29, 512 }
  0x1c   : > { %1154 = vmatpush3.xpose.msk.msra.mxu0 %vm275_vm0, %v1463_v0  ;;  %1155 = vmatprep.mubr.msk.f32.mxu0 %vm275_vm0, %v280_v1 }
  0x1d   : > { %522 = vrot.lane.b32.xlu1 %v281_v2, %s1366_s12 }
  0x1f   : > { %520 = vrot.lane.b32.xlu0 %v280_v1, %s1366_s12  ;;  %1156 = vmatmul.mubr.msk.f32.vlgmr.msra.gmra.mrb[0].mxu0 %vm275_vm0, %v281_v2  ;;  %v642_v2 = vld [vmem:[#allocation3 + $0x18] sm:$0xff]  ;;  %s1005_s12 = sshll.u32 %s243_s11, 4  ;;  %s1556_s12 = int_to_ptr.vmem [resolvable:$true] %s1005_s12 }
  0x20   : > { %p1293_p1 = scmp.lt.s32.totalorder %s1556_s12, %s1291_s29 }
  0x8d   : > { %v525_v3 = vpop.permute.xlu0 %524 }
  0x8e   : > { %1163 = vmatprep.subr.msk.mxu1 %vm275_vm0, %v525_v3 }
  0x8f   : > { %1164 = vmatpush3.xpose.msk.msra.mxu1 %vm275_vm0, %v525_v3  ;;  %v523_v4 = vpop.permute.xlu1 %522  ;;  %v401_v3 = vld [vmem:[#allocation3] sm:$0xff] }
  0x91   : > { %v521_v5 = vpop.permute.xlu0 %520 }
  0x92   : > { %1165 = vmatprep.mubr.msk.f32.mxu1 %vm275_vm0, %v521_v5 }
  0x93   : > { %1166 = vmatmul.mubr.msk.f32.vlgmr.msra.gmra.mrb[0].mxu1 %vm275_vm0, %v523_v4 }
  0xf2   : > { %v1157_v7 = vpop.f32.mrb[0].mxu0 }
  0xf3   : > { %v359_v8 = vpop.f32.mrb[1].mxu0  ;;  %v374_v9 = vsel %vm370_vm2, %v1157_v7, -inf }
  0xf4   : > { %375 = vmax.xlane.f32.xlu0 %v374_v9  ;;  %v371_v10 = vsel %vm370_vm2, %v359_v8, -inf  ;;  %v402_v9 = vld [vmem:[#allocation3 + $0x8] sm:$0xff] }
  0xf5   : > { %372 = vmax.xlane.f32.xlu1 %v371_v10 }
 0x166   : > { %v1167_v12 = vpop.f32.mrb[0].mxu1 }
 0x167   : > { %v598_v13 = vpop.f32.mrb[1].mxu1  ;;  %v613_v14 = vsel %vm370_vm2, %v1167_v12, -inf }
 0x168   : > { %614 = vmax.xlane.f32.xlu1 %v613_v14  ;;  %v610_v15 = vsel %vm370_vm2, %v598_v13, -inf }
 0x169   : > { %611 = vmax.xlane.f32.xlu0 %v610_v15 }
 0x181   : > { %v376_v19 = vpop.xlane.xlu0 %375 }
 0x182   : > { %v1497_v20 = vmax.f32 %v1492_v17, %v376_v19  ;;  %v373_v21 = vpop.xlane.xlu1 %372 }
 0x183   : > { %v1500_v22 = vmax.f32 %v1494_v18, %v373_v21 }
 0x184   : > { %v380_v23 = vsub.f32 %v1492_v17, %v1497_v20  ;;  %519 = vst.msk [vmem:[#allocation2 + $0x8] sm:$0xff] %vm266_vm1, %v1497_v20  ;;  %392 = vperm.xlu1 %1261, %v1497_v20  }
 0x185   : > { %v379_v24 = vsub.f32 %v1494_v18, %v1500_v22  ;;  %518 = vst.msk [vmem:[#allocation2] sm:$0xff] %vm266_vm1, %v1500_v22  ;;  %387 = vperm.xlu0 %1260, %v1500_v22  }
 0x186   : > { %v383_v58 = vmul.f32 1.442695, %v380_v23 }
 0x187   : > { %v381_v57 = vmul.f32 1.442695, %v379_v24 }
 0x1f5   : > { %v615_v27 = vpop.xlane.xlu1 %614 }
 0x1f6   : > { %v617_v28 = vmax.f32 %v609_v25, %v615_v27  ;;  %v612_v29 = vpop.xlane.xlu0 %611 }
 0x1f7   : > { %v616_v30 = vmax.f32 %v608_v26, %v612_v29  ;;  %v766_v29 = vld [vmem:[%s1611_s2 + $0x18] sm:$0xff] }
 0x1f8   : > { %v619_v31 = vsub.f32 %v609_v25, %v617_v28  ;;  %759 = vst.msk [vmem:[#allocation2 + $0x18] sm:$0xff] %vm266_vm1, %v617_v28 }
 0x1f9   : > { %v618_v32 = vsub.f32 %v608_v26, %v616_v30  ;;  %758 = vst.msk [vmem:[#allocation2 + $0x10] sm:$0xff] %vm266_vm1, %v616_v30  ;;  %626 = vperm.xlu1 %1261, %v616_v30  }
 0x1fa   : > { %v622_v55 = vmul.f32 1.442695, %v619_v31 }
 0x1fb   : > { %v620_v56 = vmul.f32 1.442695, %v618_v32 }
 0x1fd   : > { %631 = vperm.xlu1 %1261, %v617_v28   ;;  %v765_v28 = vld [vmem:[%s1611_s2 + $0x10] sm:$0xff] }
 0x1fe   : > { %v1187_v32 = vpack.c.bf16 %v766_v29, %v765_v28 }
 0x200   : > { %1188 = vmatprep.subr.bf16.mxu1 %v1187_v32 }
 0x201   : > { %430 = vrot.lane.b32.xlu1 %v1463_v0, %s1370_s13  ;;  %1190 = vmatpush3.bf16.msra.mxu1 %v1187_v32  ;;  %s1132_s13 = sshll.u32 %s1356_s18, 8  ;;  %s1286_s18 = scalar_lea.vmem %s1556_s12, 256 }
 0x202   : > { %s1561_s22 = scalar_lea.hbm %s1613_s4, %s1132_s13  ;;  %p1287_p12 = scmp.ne.s32.totalorder %s1556_s12, %s1286_s18 }
 0x203   : > { %v393_v37 = vpop.permute.xlu1 %392  ;;  %p1294_p2 = scmp.lt.s32.totalorder %s1292_s30, %s1286_s18 }
 0x204   : > { %v388_v33 = vpop.permute.xlu0 %387  ;;  %v396_v38 = vsub.f32 %v1157_v7, %v393_v37  ;;  %v763_v37 = vld [vmem:[%s1611_s2] sm:$0xff]  ;;  %p1288_p13 = pnand %p1287_p12, %p1440_p4 }
 0x205   : > { %v395_v34 = vsub.f32 %v359_v8, %v388_v33  ;;  %670 = vrot.lane.b32.xlu1 %v1463_v0, %s1371_s14  ;;  %p1295_p3 = por %p1294_p2, %p1293_p1 }
 0x206   : > { %v399_v39 = vmul.f32 1.442695, %v396_v38  ;;  %v764_v38 = vld [vmem:[%s1611_s2 + $0x8] sm:$0xff]  ;;  %p1289_p0 = pneg %p1288_p13 }
 0x207   : > { %v397_v35 = vmul.f32 1.442695, %v395_v34 }
 0x208   : > { %p1296_p5 = pnand %p1295_p3, %p1289_p0 }
 0x209   : > { %1262 = vpow2.f32 %v397_v35 }
 0x20a   : > { %1264 = vpow2.f32 %v399_v39 }
 0x213   : > { %v1263_v36 = vpop.eup %1262 }
 0x214   : > { %1160 = vmatprep.mubr.msk.f32.mxu0 %vm370_vm2, %v1263_v36  ;;  %v1265_v47 = vpop.eup %1264  ;;  %v405_v52 = vsel %vm370_vm2, %v1263_v36, 0.0 }
 0x215   : > { %v408_v54 = vsel %vm370_vm2, %v1265_v47, 0.0 }
 0x278   : > { %v627_v40 = vpop.permute.xlu1 %626 }
 0x279   : > { %v634_v41 = vsub.f32 %v598_v13, %v627_v40  ;;  %v1191_v40 = vpack.c.bf16 %v764_v38, %v763_v37 }
 0x27b   : > { %v636_v42 = vmul.f32 1.442695, %v634_v41  ;;  %1192 = vmatprep.subr.bf16.mxu1 %v1191_v40 }
 0x27c   : > { %v632_v43 = vpop.permute.xlu1 %631 }
 0x27d   : > { %1266 = vpow2.f32 %v636_v42  ;;  %v635_v44 = vsub.f32 %v1167_v12, %v632_v43  ;;  %v417_v43 = vld [vmem:[#allocation4 + $0x8] sm:$0xff] }
 0x27f   : > { %v638_v45 = vmul.f32 1.442695, %v635_v44 }
 0x280   : > { %v431_v46 = vpop.permute.xlu1 %430 }
 0x281   : > { %1268 = vpow2.f32 %v638_v45  ;;  %1158 = vmatprep.subr.mxu0 %v431_v46  ;;  %v416_v45 = vld [vmem:[#allocation4] sm:$0xff] }
 0x282   : > { %1159 = vmatpush3.msra.mxu0 %v431_v46  ;;  %1270 = vpow2.f32 %v622_v55 }
 0x283   : > { %1161 = vmatmul.mubr.msk.f32.vlgmr.msra.gmra.mrb[2].mxu0 %vm370_vm2, %v1265_v47  ;;  %1272 = vpow2.f32 %v620_v56 }
 0x284   : > { %v671_v48 = vpop.permute.xlu1 %670  ;;  %1274 = vpow2.f32 %v381_v57 }
 0x285   : > { %1168 = vmatprep.subr.mxu0 %v671_v48  ;;  %1276 = vpow2.f32 %v383_v58 }
 0x286   : > { %1169 = vmatpush3.msra.mxu0 %v671_v48 }
 0x287   : > { %v1267_v49 = vpop.eup %1266 }
 0x288   : > { %1170 = vmatprep.mubr.msk.f32.mxu0 %vm370_vm2, %v1267_v49  ;;  %v645_v50 = vsel %vm370_vm2, %v1267_v49, 0.0 }
 0x289   : > { %646 = vadd.xlane.f32.xlu1 %v645_v50 }
 0x28b   : > { %v1269_v51 = vpop.eup %1268 }
 0x28c   : > { %1171 = vmatmul.mubr.msk.f32.vlgmr.msra.gmra.mrb[4].mxu0 %vm370_vm2, %v1269_v51  ;;  %v648_v53 = vsel %vm370_vm2, %v1269_v51, 0.0  ;;  %v1271_v59 = vpop.eup %1270 }
 0x28d   : > { %406 = vadd.xlane.f32.xlu1 %v405_v52  ;;  %649 = vadd.xlane.f32.xlu0 %v648_v53  ;;  %v1273_v60 = vpop.eup %1272  ;;  %v644_v5 = vmul.f32 %v1271_v59, %v642_v2  ;;  %v657_v53 = vld [vmem:[#allocation4 + $0x18] sm:$0xff] }
 0x28e   : > { %v1275_v61 = vpop.eup %1274  ;;  %v643_v0 = vmul.f32 %v1273_v60, %v641_v63 }
 0x28f   : > { %v1277_v62 = vpop.eup %1276  ;;  %v403_v6 = vmul.f32 %v1275_v61, %v401_v3 }
 0x290   : > { %v404_v12 = vmul.f32 %v1277_v62, %v402_v9  ;;  %v1125_v9 = vld [vmem:[%s1612_s3] ss:$0 sm:$0xff] }
 0x291   : > { %409 = vadd.xlane.f32.xlu1 %v408_v54  ;;  %v656_v54 = vld [vmem:[#allocation4 + $0x10] sm:$0xff] }
 0x2a2   : > { %665 = vperm.xlu1 %1261, %v1271_v59  }
 0x2a3   : > { %660 = vperm.xlu0 %1260, %v1273_v60  }
 0x2a6   : > { %420 = vperm.xlu1 %1261, %v1275_v61  }
 0x2a7   : > { %425 = vperm.xlu0 %1260, %v1277_v62  }
 0x316   : > { %v647_v1 = vpop.xlane.xlu1 %646 }
 0x317   : > { %v651_v4 = vadd.f32 %v647_v1, %v643_v0 }
 0x319   : > { %653 = vst.msk [vmem:[#allocation3 + $0x10] sm:$0xff] %vm266_vm1, %v651_v4 }
 0x31a   : > { %v650_v7 = vpop.xlane.xlu0 %649  ;;  %v407_v8 = vpop.xlane.xlu1 %406 }
 0x31b   : > { %v652_v10 = vadd.f32 %v650_v7, %v644_v5  ;;  %v411_v11 = vadd.f32 %v407_v8, %v403_v6 }
 0x31d   : > { %654 = vst.msk [vmem:[#allocation3 + $0x18] sm:$0xff] %vm266_vm1, %v652_v10  ;;  %414 = vst.msk [vmem:[#allocation3] sm:$0xff] %vm266_vm1, %v411_v11 }
 0x31e   : > { %v410_v13 = vpop.xlane.xlu1 %409 }
 0x31f   : > { %v412_v14 = vadd.f32 %v410_v13, %v404_v12 }
 0x320   : > { %v791_v15 = vld [vmem:[#allocation3 + $0x10] sm:$0xff] }
 0x321   : > { %415 = vst.msk [vmem:[#allocation3 + $0x8] sm:$0xff] %vm266_vm1, %v412_v14  ;;  %1278 = vrcp.f32 %v791_v15 }
 0x322   : > { %v661_v41 = vpop.permute.xlu0 %660  ;;  %v666_v42 = vpop.permute.xlu1 %665 }
 0x323   : > { %v669_v55 = vmul.f32 %v666_v42, %v657_v53  ;;  %v668_v56 = vmul.f32 %v661_v41, %v656_v54 }
 0x324   : > { %v792_v16 = vld [vmem:[#allocation3 + $0x18] sm:$0xff]  ;;  %v767_v17 = vld [vmem:[#allocation3] sm:$0xff] }
 0x325   : > { %1280 = vrcp.f32 %v792_v16 }
 0x326   : > { %1282 = vrcp.f32 %v767_v17  ;;  %v426_v44 = vpop.permute.xlu0 %425  ;;  %v421_v46 = vpop.permute.xlu1 %420 }
 0x327   : > { %v429_v47 = vmul.f32 %v426_v44, %v417_v43  ;;  %v428_v48 = vmul.f32 %v421_v46, %v416_v45 }
 0x328   : > { %v768_v18 = vld [vmem:[#allocation3 + $0x8] sm:$0xff] }
 0x329   : > { %1284 = vrcp.f32 %v768_v18 }
 0x32b   : > { %v1279_v19 = vpop.eup %1278 }
 0x32c   : > { %v795_v20 = vmul.f32 %v1279_v19, %v791_v15 }
 0x32e   : > { %v797_v21 = vsub.f32 2.0, %v795_v20 }
 0x32f   : > { %v1281_v22 = vpop.eup %1280 }
 0x330   : > { %v1283_v23 = vpop.eup %1282  ;;  %v799_v24 = vmul.f32 %v1279_v19, %v797_v21  ;;  %v796_v25 = vmul.f32 %v1281_v22, %v792_v16 }
 0x331   : > { %v771_v26 = vmul.f32 %v1283_v23, %v767_v17 }
 0x332   : > { %805 = vperm.xlu1 %1261, %v799_v24   ;;  %v798_v27 = vsub.f32 2.0, %v796_v25 }
 0x333   : > { %v1285_v30 = vpop.eup %1284  ;;  %v773_v31 = vsub.f32 2.0, %v771_v26 }
 0x334   : > { %v800_v33 = vmul.f32 %v1281_v22, %v798_v27  ;;  %v772_v34 = vmul.f32 %v1285_v30, %v768_v18 }
 0x335   : > { %v775_v35 = vmul.f32 %v1283_v23, %v773_v31 }
 0x336   : > { %810 = vperm.xlu0 %1260, %v800_v33   ;;  %v774_v36 = vsub.f32 2.0, %v772_v34 }
 0x337   : > { %781 = vperm.xlu1 %1261, %v775_v35  }
 0x338   : > { %v776_v39 = vmul.f32 %v1285_v30, %v774_v36 }
 0x33a   : > { %786 = vperm.xlu0 %1260, %v776_v39  }
 0x356   : > { %v1162_v49 = vpop.f32.mrb[2].mxu0 }
 0x357   : > { %v515_v50 = vadd.f32 %v1162_v49, %v429_v47  ;;  %v505_v51 = vpop.f32.mrb[3].mxu0 }
 0x358   : > { %v514_v52 = vadd.f32 %v505_v51, %v428_v48 }
 0x359   : > { %517 = vst.msk [vmem:[#allocation4 + $0x8] sm:$0xff] %vm275_vm0, %v515_v50 }
 0x35a   : > { %516 = vst.msk [vmem:[#allocation4] sm:$0xff] %vm275_vm0, %v514_v52 }
 0x35f   : > { %v1172_v57 = vpop.f32.mrb[4].mxu0 }
 0x360   : > { %v755_v58 = vadd.f32 %v1172_v57, %v669_v55  ;;  %v745_v59 = vpop.f32.mrb[5].mxu0  ;;  %v778_v7 = vld [vmem:[#allocation4 + $0x8] sm:$0xff] }
 0x361   : > { %v754_v60 = vadd.f32 %v745_v59, %v668_v56  ;;  %v777_v3 = vld [vmem:[#allocation4] sm:$0xff] }
 0x362   : > { %757 = vst.msk [vmem:[#allocation4 + $0x18] sm:$0xff] %vm275_vm0, %v755_v58 }
 0x363   : > { %756 = vst.msk [vmem:[#allocation4 + $0x10] sm:$0xff] %vm275_vm0, %v754_v60 }
 0x369   : > { %v802_v1 = vld [vmem:[#allocation4 + $0x18] sm:$0xff] }
 0x36a   : > { %v801_v61 = vld [vmem:[#allocation4 + $0x10] sm:$0xff] }
 0x3b1   : > { %v806_v62 = vpop.permute.xlu1 %805 }
 0x3b2   : > { %v813_v63 = vmul.f32 %v806_v62, %v801_v61 }
 0x3b4   : > { %1177 = vmatprep.mubr.msk.f32.mxu1 %vm275_vm0, %v813_v63 }
 0x3b5   : > { %v811_v0 = vpop.permute.xlu0 %810 }
 0x3b6   : > { %v814_v2 = vmul.f32 %v811_v0, %v802_v1  ;;  %v782_v4 = vpop.permute.xlu1 %781 }
 0x3b7   : > { %v789_v5 = vmul.f32 %v782_v4, %v777_v3 }
 0x3b8   : > { %1178 = vmatmul.mubr.msk.f32.vlgmr.msra.gmra.mrb[2].mxu1 %vm275_vm0, %v814_v2 }
 0x3b9   : > { %1194 = vmatpush3.bf16.msra.mxu1 %v1191_v40  ;;  %1184 = vmatprep.mubr.msk.f32.mxu1 %vm275_vm0, %v789_v5  ;;  %v787_v6 = vpop.permute.xlu0 %786 }
 0x3ba   : > { %v790_v8 = vmul.f32 %v787_v6, %v778_v7 }
 0x3c0   : > { %1185 = vmatmul.mubr.msk.f32.vlgmr.msra.gmra.mrb[2].mxu1 %vm275_vm0, %v790_v8 }
 0x493   : > { %v1186_v10 = vpop.f32.mrb[2].mxu1 }
 0x494   : > { %v985_v11 = vadd.f32 %v1186_v10, %v1125_v9  ;;  %v968_v12 = vpop.f32.mrb[3].mxu1 }
 0x495   : > { %v984_v13 = vadd.f32 %v1125_v9, %v968_v12 }
 0x496   : > { %988 = vst.msk [vmem:[%s243_s11 + $0x8] sm:$0xff] %vm986_vm3, %v985_v11 }
 0x497   : > { %987 = vst.msk [vmem:[%s243_s11] sm:$0xff] %vm986_vm3, %v984_v13 }
 0x498   : > { %1299 = shalt.err (!%p1296_p5)
}
 0x499   : > { %s1300_s5 = scalar_lea.hbm %s1561_s22, 256  ;;  %s1304_s8 = scalar_lea.hbm %s1613_s4, 512 }
 0x49a   : > { %p1301_p6 = scmp.ne.s32.totalorder %s1561_s22, %s1300_s5  ;;  %p1305_p10 = scmp.lt.u32.totalorder %s1561_s22, %s1613_s4 }
 0x49b   : > { %p1306_p11 = scmp.lt.u32.totalorder %s1304_s8, %s1300_s5  ;;  %p1308_p13 = scmp.lt.u32.totalorder %s1300_s5, %s1561_s22 }
 0x49c   : > { %p1302_p7 = pnand %p1301_p6, %p1440_p4 }
 0x49d   : > { %p1307_p12 = por %p1306_p11, %p1305_p10 }
 0x49e   : > { %p1303_p9 = pneg %p1302_p7 }
 0x49f   : > { %p1309_p0 = por %p1308_p13, %p1307_p12 }
 0x4a1   : > { %p1310_p1 = pnand %p1309_p0, %p1303_p9 }
 0x4a3   : > { %1313 = shalt.err (!%p1310_p1)
}
 0x4a4   : > { %s1373_s11 = smov 128   ;;  %s1374_s13 = smov 8  }
 0x4a5   : > { %1197 = dma.vmem_to_hbm [thread:$0]  (%p1440_p4), %s1556_s12, 256, %s1561_s22, %s1563_s24, %s1373_s11, %s1373_s11, %s1374_s13  }
 0x4a6 PF: > { %p1203_p2 = scmp.ge.s32.totalorder %s1364_s20, 2  ;;  %s1020_s14 = sand.u32 1, %s1344_s15  }
 0x4a7   : > { %s1021_s21 = scalar_lea.sflag [#allocation6], %s1020_s14 }
 0x4a8   : > { %p1200_p3 = pnand %p1203_p2, %p1447_p8 }
 0x4aa   : > { %1339 = dma.done.wait (!%p1200_p3), %s1021_s21, 256  }
 0x4ab   : > { %1341 = vsyncadd (!%p1200_p3), %s1021_s21, 4294967040  ;;  %s17_s20 = sadd.s32 1, %s1364_s20   ;;  %s1616_s15 = smov %s1348_s16 }
 0x4ac   : > { %p14_p5 = scmp.ge.s32.totalorder %s17_s20, 4   ;;  %s1617_s16 = smov %s1352_s17 }
 0x4ad   : > { %s1618_s17 = smov %s1453_s28  ;;  %s1619_s18 = smov %s1360_s19 }
 0x4ae   : > { %s1620_s19 = smov %s1622_s23  ;;  %16 = sbr.rel (!%p14_p5) target bundleno = 4 (0x4), region = 85 }
 0x4b5   :  { %1026 = vsyncpa [#allocation6], 1 }
 0x4b6   :  { %1028 = vsyncpa [#allocation6 + $0x1], 1 }

</bundles_post_ra>
